<compile_context>
chip_gen: v7x
topology: tpu7x:2x2x1
jax: 0.10.0
libtpu: 0.0.40
codegen_flags: <defaults>
</compile_context>

<pallas_src>
import functools

import numpy as np
import jax
import jax.numpy as jnp
from jax.experimental import pallas as pl
from jax.experimental.pallas import tpu as pltpu

_LANES = 128          # lane width of a vreg (fast axis)
_MAX_TILE_ROWS = 2048  # 2048 * 128 * 4B = 1 MiB per block (x2 buffers in + out)


def _clip_boxes_kernel(boxes_ref, out_ref, *, width, height):
    # boxes_ref / out_ref: VMEM (TILE_ROWS, 128) slabs of the flat (..., 4) boxes.
    x = boxes_ref[...]

    # clamp(min=0): correct for coords 0/1; values at coords 2/3 are unused.
    clamped = jnp.maximum(x, jnp.asarray(0.0, dtype=x.dtype))

    # For lanes with coord 2/3, the (already clamped) x1/y1 live exactly two
    # lanes to the left in the same row (128 % 4 == 0 keeps each box inside
    # one row, so no wraparound issue for those lanes).
    rolled = pltpu.roll(clamped, shift=2, axis=1)

    coord = jax.lax.broadcasted_iota(jnp.int32, x.shape, dimension=1) % 4
    thresh = jnp.where(coord == 2, width,
                       jnp.where(coord == 3, height, 0.0)).astype(x.dtype)

    base = jnp.where(coord < 2, clamped, rolled)
    out_ref[...] = jnp.maximum(base, thresh)   # one unmasked full-tile store


def clip_boxes(boxes, img):
    """Functional equivalent of ClipBoxes.forward(boxes, img)."""
    B, N, four = boxes.shape
    assert four == 4
    _, _, height, width = img.shape
    width = float(width)    # compile-time constants, no SMEM operand
    height = float(height)

    total = B * N * 4
    rows = pl.cdiv(total, _LANES)
    rows = ((rows + 7) // 8) * 8            # sublane axis -> multiple of 8
    padded_total = rows * _LANES

    flat = boxes.reshape(-1)
    if padded_total != total:
        flat = jnp.pad(flat, (0, padded_total - total))
    x2d = flat.reshape(rows, _LANES)        # native flat layout, lane-dense

    tile_rows = min(_MAX_TILE_ROWS, rows)   # rows is a multiple of 8
    grid = (pl.cdiv(rows, tile_rows),)

    kernel = functools.partial(_clip_boxes_kernel, width=width, height=height)

    out2d = pl.pallas_call(
        kernel,
        out_shape=jax.ShapeDtypeStruct((rows, _LANES), boxes.dtype),
        grid=grid,
        in_specs=[pl.BlockSpec((tile_rows, _LANES), lambda i: (i, 0))],
        out_specs=pl.BlockSpec((tile_rows, _LANES), lambda i: (i, 0)),
        input_output_aliases={0: 0},        # in-place, like the PyTorch module
        compiler_params=pltpu.CompilerParams(
            dimension_semantics=("parallel",)),
    )(x2d)

    out_flat = out2d.reshape(-1)
    if padded_total != total:
        out_flat = out_flat[:total]
    return out_flat.reshape(B, N, 4)


def _reference(boxes, img):
    """Pure-numpy reference reproducing the PyTorch in-place semantics."""
    b = np.array(boxes).copy()
    _, _, height, width = img.shape
    b[:, :, 0] = np.maximum(b[:, :, 0], 0.0)
    b[:, :, 1] = np.maximum(b[:, :, 1], 0.0)
    b[:, :, 2] = np.maximum(b[:, :, 0], float(width))
    b[:, :, 3] = np.maximum(b[:, :, 1], float(height))
    return b


if __name__ == "__main__":
    key = jax.random.PRNGKey(0)
    k_boxes, k_img = jax.random.split(key)

    B, N = 2, 8                  # batch, num boxes
    C, H, W = 4, 16, 16          # img NCHW

    # Boxes with negative / large values so every clamp branch is exercised.
    boxes = jax.random.uniform(k_boxes, (B, N, 4), dtype=jnp.float32,
                               minval=-10.0, maxval=30.0)
    img = jax.random.normal(k_img, (B, C, H, W), dtype=jnp.float32)

    out = clip_boxes(boxes, img)
    out = jax.block_until_ready(out)

    ref = _reference(boxes, img)
    assert out.shape == boxes.shape
    assert np.allclose(np.array(out), ref, atol=1e-6), "mismatch vs reference"

    print("KERNEL_OK")
</pallas_src>

<mosaic_0001>
module attributes {stable_mosaic.version = 11 : i64} {
  func.func @_clip_boxes_kernel(%arg0: i32, %arg1: memref<8x128xf32, #tpu.memory_space<vmem>>, %arg2: memref<8x128xf32, #tpu.memory_space<vmem>>) attributes {dimension_semantics = [#tpu.dimension_semantics<parallel>], iteration_bounds = array<i64: 1>, scalar_prefetch = 0 : i64, scratch_operands = 0 : i64, tpu.core_type = #tpu.core_type<tc>, window_params = [{transform_indices = @transform_0, window_bounds = array<i64: 8, 128>}, {transform_indices = @transform_1, window_bounds = array<i64: 8, 128>}]} {
    %c0 = arith.constant 0 : index
    %c0_0 = arith.constant 0 : index
    %0 = vector.load %arg1[%c0, %c0_0] : memref<8x128xf32, #tpu.memory_space<vmem>>, vector<8x128xf32>
    %cst = arith.constant 0.000000e+00 : f32
    %1 = vector.broadcast %cst : f32 to vector<8x128xf32>
    %2 = arith.maximumf %0, %1 : vector<8x128xf32>
    %c2_i32 = arith.constant 2 : i32
    %3 = tpu.dynamic_rotate %2 by %c2_i32 dim 1 : vector<8x128xf32>, i32 -> vector<8x128xf32>
    %4 = tpu.iota {dimensions = array<i32: 1>} : vector<8x128xi32>
    %c4_i32 = arith.constant 4 : i32
    %c0_i32 = arith.constant 0 : i32
    %5 = arith.cmpi eq, %c4_i32, %c0_i32 : i32
    %c1_i32 = arith.constant 1 : i32
    %6 = arith.select %5, %c1_i32, %c4_i32 : i32
    %7 = vector.broadcast %6 : i32 to vector<8x128xi32>
    %8 = arith.remsi %4, %7 : vector<8x128xi32>
    %c0_i32_1 = arith.constant 0 : i32
    %9 = vector.broadcast %c0_i32_1 : i32 to vector<8x128xi32>
    %10 = arith.cmpi ne, %8, %9 : vector<8x128xi32>
    %c0_i32_2 = arith.constant 0 : i32
    %11 = vector.broadcast %c0_i32_2 : i32 to vector<8x128xi32>
    %12 = arith.cmpi slt, %8, %11 : vector<8x128xi32>
    %c0_i32_3 = arith.constant 0 : i32
    %13 = arith.cmpi slt, %6, %c0_i32_3 : i32
    %14 = vector.broadcast %13 : i1 to vector<8x128xi1>
    %15 = vector.broadcast %14 : vector<8x128xi1> to vector<8x128xi1>
    %16 = arith.xori %12, %15 : vector<8x128xi1>
    %17 = arith.andi %16, %10 : vector<8x128xi1>
    %18 = vector.broadcast %6 : i32 to vector<8x128xi32>
    %19 = arith.addi %8, %18 : vector<8x128xi32>
    %20 = arith.select %17, %19, %8 : vector<8x128xi1>, vector<8x128xi32>
    %c2_i32_4 = arith.constant 2 : i32
    %21 = vector.broadcast %c2_i32_4 : i32 to vector<8x128xi32>
    %22 = arith.cmpi eq, %20, %21 : vector<8x128xi32>
    %c3_i32 = arith.constant 3 : i32
    %23 = vector.broadcast %c3_i32 : i32 to vector<8x128xi32>
    %24 = arith.cmpi eq, %20, %23 : vector<8x128xi32>
    %cst_5 = arith.constant 1.600000e+01 : f32
    %cst_6 = arith.constant 0.000000e+00 : f32
    %25 = vector.broadcast %cst_5 : f32 to vector<8x128xf32>
    %26 = vector.broadcast %cst_6 : f32 to vector<8x128xf32>
    %27 = arith.select %24, %25, %26 : vector<8x128xi1>, vector<8x128xf32>
    %cst_7 = arith.constant 1.600000e+01 : f32
    %28 = vector.broadcast %cst_7 : f32 to vector<8x128xf32>
    %29 = arith.select %22, %28, %27 : vector<8x128xi1>, vector<8x128xf32>
    %c2_i32_8 = arith.constant 2 : i32
    %30 = vector.broadcast %c2_i32_8 : i32 to vector<8x128xi32>
    %31 = arith.cmpi slt, %20, %30 : vector<8x128xi32>
    %32 = arith.select %31, %2, %3 : vector<8x128xi1>, vector<8x128xf32>
    %33 = arith.maximumf %32, %29 : vector<8x128xf32>
    %c0_9 = arith.constant 0 : index
    %c0_10 = arith.constant 0 : index
    %34 = vector.load %arg2[%c0_9, %c0_10] : memref<8x128xf32, #tpu.memory_space<vmem>>, vector<8x128xf32>
    tpu.vector_store %arg2[%c0_9, %c0_10], %33 {strides = array<i32>} : memref<8x128xf32, #tpu.memory_space<vmem>>, vector<8x128xf32>,
    return
  }
  func.func @transform_0(%arg0: i32) -> (i32, i32) {
    %c0_i32 = arith.constant 0 : i32
    %c0_i32_0 = arith.constant 0 : i32
    return %arg0, %c0_i32 : i32, i32
  }
  func.func @transform_1(%arg0: i32) -> (i32, i32) {
    %c0_i32 = arith.constant 0 : i32
    %c0_i32_0 = arith.constant 0 : i32
    return %arg0, %c0_i32 : i32, i32
  }
}

</mosaic_0001>

<bundles_post_ra>
// kernel: tpu_custom_call.1
= control target key start
LH: loop header
LB: loop body
LE: loop exit
PB: predicated region body
PF: predicated region fallthrough
CT: control target
= control target key end

     0   :  { %6 = vsyncpa [#allocation3], 0  ;;  %s152_s0 = inlined_call_operand.hbm [shape: f32[8,128], index: 0, kind: input, shape index: {}, may-alias: {0,1}]   ;;  %s153_s1 = inlined_call_operand.hbm [shape: f32[8,128], index: 1, kind: output, shape index: {}, may-alias: {0,1}]  }
   0x1   :  { %7 = vsyncpa [#allocation4], 0  ;;  %s114_s6 = smov [#allocation2]   ;;  %s66_s10 = scalar_lea.hbm %s152_s0, 128 }
   0x2   :  { %s14_s7 = sshll.u32 %s114_s6, 4  ;;  %p67_p0 = scmp.ne.s32.totalorder %s152_s0, %s66_s10  ;;  %s15_s7 = int_to_ptr.vmem [resolvable:$true] %s14_s7 }
   0x3   :  { %p70_p1 = scmp.lt.u32.totalorder %s66_s10, %s152_s0 }
   0x5   :  { %p72_p2 = pnand %p70_p1, %p67_p0 }
   0x7   :  { %75 = shalt.err (!%p72_p2)
}
   0x8   :  { %s76_s15 = scalar_lea.vmem %s15_s7, 128  ;;  %p81_p4 = scmp.lt.s32.totalorder %s15_s7, %s15_s7 }
   0x9   :  { %p77_p3 = scmp.ne.s32.totalorder %s15_s7, %s76_s15  ;;  %p82_p5 = scmp.lt.s32.totalorder %s76_s15, %s76_s15 }
   0xb   :  { %p83_p6 = por %p82_p5, %p81_p4 }
   0xd   :  { %p84_p7 = pnand %p83_p6, %p77_p3 }
   0xf   :  { %87 = shalt.err (!%p84_p7)
}
  0x10   :  { %17 = dma.hbm_to_vmem [thread:$0]  %s152_s0, 128, %s15_s7, [#allocation3]  }
  0x11   :  { %110 = dma.done.wait [#allocation3], 128  }
  0x12   :  { %111 = vsyncadd [#allocation3], 4294967168  ;;  %v21_v0 = vld [vmem:[#allocation2] sm:$0xff]  ;;  %s115_s18 = smov 2   ;;  %v25_v2 = vlaneseq  ;;  %v116_v5 = vmov 0.0   ;;  %s117_s19 = smov [#allocation5]  }
  0x13   :  { %v22_v1 = vmax.f32 %v21_v0, 0.0  ;;  %s53_s20 = sshll.u32 %s117_s19, 4  ;;  %s54_s20 = int_to_ptr.vmem [resolvable:$true] %s53_s20 }
  0x14   :  { %v26_v3 = vand.u32 127, %v25_v2  ;;  %s88_s0 = scalar_lea.vmem %s54_s20, 128  ;;  %p93_p9 = scmp.lt.s32.totalorder %s54_s20, %s54_s20 }
  0x15   :  { %23 = vrot.lane.b32.xlu0 %v22_v1, %s115_s18  ;;  %p89_p8 = scmp.ne.s32.totalorder %s54_s20, %s88_s0  ;;  %p94_p10 = scmp.lt.s32.totalorder %s88_s0, %s88_s0 }
  0x16   :  { %v31_v4 = vand.u32 3, %v26_v3 }
  0x17   :  { %p95_p11 = por %p94_p10, %p93_p9 }
  0x18   :  { %vm40_vm0 = vcmp.eq.s32.totalorder %v31_v4, 3  ;;  %vm39_vm1 = vcmp.eq.s32.totalorder %v31_v4, 2  ;;  %vm43_vm2 = vcmp.lt.s32.totalorder %v31_v4, 2 }
  0x19   :  { %v41_v6 = vsel %vm40_vm0, 16.0, %v116_v5  ;;  %p96_p12 = pnand %p95_p11, %p89_p8 }
  0x1a   :  { %v42_v7 = vsel %vm39_vm1, 16.0, %v41_v6 }
  0x87   :  { %v24_v8 = vpop.permute.xlu0 %23 }
  0x88   :  { %v44_v9 = vsel %vm43_vm2, %v22_v1, %v24_v8 }
  0x89   :  { %v45_v10 = vmax.f32 %v44_v9, %v42_v7 }
  0x8b   :  { %46 = vst [vmem:[#allocation5] sm:$0xff] %v45_v10 }
  0x8c   :  { %99 = shalt.err (!%p96_p12)
}
  0x8d   :  { %s100_s23 = scalar_lea.hbm %s153_s1, 128 }
  0x8e   :  { %p101_p13 = scmp.ne.s32.totalorder %s153_s1, %s100_s23  ;;  %p104_p0 = scmp.lt.u32.totalorder %s100_s23, %s153_s1 }
  0x90   :  { %p106_p1 = pnand %p104_p0, %p101_p13 }
  0x92   :  { %109 = shalt.err (!%p106_p1)
}
  0x93   :  { %56 = dma.vmem_to_hbm [thread:$0]  %s54_s20, 128, %s153_s1, [#allocation4]  }
  0x94   :  { %112 = dma.done.wait [#allocation4], 128  }
  0x95   :  { %113 = vsyncadd [#allocation4], 4294967168 }
  0x96   :  { %60 = vsyncpa [#allocation3], 1 }
  0x97   :  { %61 = vsyncpa [#allocation4], 1 }

</bundles_post_ra>
